<compile_context>
chip_gen: v7x
topology: tpu7x:2x2x1
jax: 0.10.0
libtpu: 0.0.40
codegen_flags: <defaults>
</compile_context>

<pallas_src>
import jax
import jax.numpy as jnp
from jax.experimental import pallas as pl
from jax.experimental.pallas import tpu as pltpu


def _round_up(x, m):
    return (x + m - 1) // m * m


# ------------------------------------------------------------------ kernel ---

def _autoencoder_kernel(x_ref,
                        w1_ref, b1_ref,
                        w2_ref, b2_ref,
                        w34_ref, b34_ref,
                        w5_ref, b5_ref,
                        w6_ref, b6_ref,
                        o_ref):
    # Single conversion point: f32 activations in, bf16 MXU operands,
    # f32 accumulation / bias / nonlinearities.
    h = x_ref[...].astype(jnp.bfloat16)

    # ---- encoder: D -> 128 -> 64 ----
    a = jnp.dot(h, w1_ref[...], preferred_element_type=jnp.float32) + b1_ref[...]
    h = jnp.maximum(a, 0.0).astype(jnp.bfloat16)                       # ReLU

    a = jnp.dot(h, w2_ref[...], preferred_element_type=jnp.float32) + b2_ref[...]
    h = jnp.maximum(a, 0.0).astype(jnp.bfloat16)                       # ReLU

    # ---- fused bottleneck: 64 -> 32 -> 64 (no activation in between);
    #      decoder's first ReLU applied after the fused matmul ----
    a = jnp.dot(h, w34_ref[...], preferred_element_type=jnp.float32) + b34_ref[...]
    h = jnp.maximum(a, 0.0).astype(jnp.bfloat16)                       # ReLU

    # ---- decoder: 64 -> 128 -> D ----
    a = jnp.dot(h, w5_ref[...], preferred_element_type=jnp.float32) + b5_ref[...]
    h = jnp.maximum(a, 0.0).astype(jnp.bfloat16)                       # ReLU

    a = jnp.dot(h, w6_ref[...], preferred_element_type=jnp.float32) + b6_ref[...]
    # sigmoid(a) = 1 / (1 + exp(-a)): exp on the EUP, approx reciprocal also on
    # the EUP slot (avoids a VPU divide in the epilogue).
    o_ref[...] = pl.reciprocal(1.0 + jnp.exp(-a), approx=True).astype(o_ref.dtype)


# ----------------------------------------------------------------- wrapper ---

def prepare_params(params):
    """One-time parameter prep (hoisted out of the per-forward graph):
       * fuse the activation-free 64->32->64 pair: W34 = W3 @ W4, b34 = b3 @ W4 + b4
       * pad the feature dim to a multiple of 128 (lane-dense I/O)
       * cast matmul operands to bf16, biases to f32.
       Returns (consts, D, D_pad)."""
    (w1, b1), (w2, b2), (w3, b3), (w4, b4), (w5, b5), (w6, b6) = params
    D = w1.shape[0]
    D_pad = _round_up(D, 128)

    w3f, w4f = w3.astype(jnp.float32), w4.astype(jnp.float32)
    w34 = w3f @ w4f
    b34 = b3.astype(jnp.float32) @ w4f + b4.astype(jnp.float32)

    if D_pad != D:
        # zero-pad: extra x columns contribute 0 to layer 1; extra output
        # columns are computed but sliced off by the wrapper.
        w1 = jnp.pad(w1, ((0, D_pad - D), (0, 0)))
        w6 = jnp.pad(w6, ((0, 0), (0, D_pad - D)))
        b6 = jnp.pad(b6, ((0, 0), (0, D_pad - D)))

    consts = (w1.astype(jnp.bfloat16), b1.astype(jnp.float32),
              w2.astype(jnp.bfloat16), b2.astype(jnp.float32),
              w34.astype(jnp.bfloat16), b34.astype(jnp.float32),
              w5.astype(jnp.bfloat16), b5.astype(jnp.float32),
              w6.astype(jnp.bfloat16), b6.astype(jnp.float32))
    return consts, D, D_pad


def autoencoder_forward(x, prepared, *, batch_tile=2048, out_dtype=None):
    """x: (B, input_dim) float32. `prepared` comes from prepare_params(params).
       Set out_dtype=jnp.bfloat16 if the consumer tolerates it (cuts HBM write
       traffic 2x); default keeps x.dtype."""
    consts, D, D_pad = prepared
    B = x.shape[0]
    assert x.shape[1] == D, (x.shape, D)
    out_dtype = out_dtype or x.dtype

    # --- batch tiling: tiles are multiples of 16, balanced, padding <= ~15
    #     rows per tile; >=2 tiles when B >= 32 so v7x can use both TCs. ---
    batch_tile = max(16, _round_up(int(batch_tile), 16))
    min_tiles = 2 if B >= 32 else 1
    n_tiles = max(pl.cdiv(B, batch_tile), min_tiles)
    tb = _round_up(pl.cdiv(B, n_tiles), 16)

    # Keep the activation double-buffer footprint (2 bufs x (in+out)) well under
    # a 48 MiB VMEM budget (v7x has only 64 MiB physical VMEM).
    vmem_budget = 48 * 1024 * 1024
    act_budget = vmem_budget - 8 * 1024 * 1024          # headroom for weights etc.
    tb_cap = max(16, (act_budget // (2 * 2 * D_pad * 4)) // 16 * 16)
    tb = min(tb, tb_cap)

    n_tiles = pl.cdiv(B, tb)
    padded_b = n_tiles * tb

    xp = x
    if D_pad != D:
        xp = jnp.pad(xp, ((0, 0), (0, D_pad - D)))
    if padded_b != B:
        xp = jnp.pad(xp, ((0, padded_b - B), (0, 0)))

    act_spec = pl.BlockSpec((tb, D_pad), lambda i: (i, 0))

    def const_spec(arr):
        # Constant index_map -> weights/biases stay VMEM-resident across steps.
        # TODO(synk): for very large input_dim, single-buffer these via
        # pipeline_mode=pl.Buffered(1); irrelevant at D=256.
        return pl.BlockSpec(arr.shape, lambda i: (0, 0))

    out = pl.pallas_call(
        _autoencoder_kernel,
        out_shape=jax.ShapeDtypeStruct((padded_b, D_pad), out_dtype),
        grid=(n_tiles,),
        in_specs=[act_spec] + [const_spec(c) for c in consts],
        out_specs=act_spec,
        compiler_params=pltpu.CompilerParams(
            dimension_semantics=("parallel",),
            vmem_limit_bytes=vmem_budget,
        ),
    )(xp, *consts)

    if padded_b != B or D_pad != D:
        out = out[:B, :D]
    return out


# ------------------------------------------------------------- init / ref ---

def init_params(key, input_dim):
    """Deterministic init of the 6 Linear layers (PyTorch (out,in) stored as (in,out))."""
    dims = [(input_dim, 128), (128, 64), (64, 32),      # encoder
            (32, 64), (64, 128), (128, input_dim)]      # decoder
    params = []
    for (fan_in, fan_out) in dims:
        key, kw, kb = jax.random.split(key, 3)
        bound = 1.0 / jnp.sqrt(fan_in)
        w = jax.random.uniform(kw, (fan_in, fan_out), jnp.float32, -bound, bound)
        b = jax.random.uniform(kb, (1, fan_out), jnp.float32, -bound, bound)
        params.append((w, b))
    return params


def reference_forward(x, params):
    """Full-precision, unfused 6-layer reference (matches the PyTorch module)."""
    h = x
    for i, (w, b) in enumerate(params):
        h = h @ w + b
        if i in (0, 1, 3, 4):
            h = jnp.maximum(h, 0.0)
    return jax.nn.sigmoid(h)


# -------------------------------------------------------------------- main ---

if __name__ == "__main__":
    key = jax.random.PRNGKey(0)
    k_in, k_p, k_p2, k_in2, k_in3 = jax.random.split(key, 5)

    # Case 1: lane-dense D (256), tiny batch (single grid step).
    batch, input_dim = 8, 256
    x = jax.random.uniform(k_in, (batch, input_dim), jnp.float32)
    params = init_params(k_p, input_dim)
    prepared = prepare_params(params)

    out = jax.block_until_ready(autoencoder_forward(x, prepared))
    ref = reference_forward(x, params)
    assert out.shape == (batch, input_dim)
    # bf16 matmul operands + bottleneck fusion + approx reciprocal -> relaxed tol.
    assert jnp.allclose(out, ref, atol=2e-2, rtol=2e-2)

    # Case 2: multi-step grid + balanced batch padding (B=20, 16-row tiles).
    x2 = jax.random.uniform(k_in2, (20, input_dim), jnp.float32)
    out2 = jax.block_until_ready(autoencoder_forward(x2, prepared, batch_tile=16))
    ref2 = reference_forward(x2, params)
    assert out2.shape == (20, input_dim)
    assert jnp.allclose(out2, ref2, atol=2e-2, rtol=2e-2)

    # Case 3: feature-dim padding path (D=200 -> lane-dense 256).
    input_dim3 = 200
    params3 = init_params(k_p2, input_dim3)
    prepared3 = prepare_params(params3)
    x3 = jax.random.uniform(k_in3, (8, input_dim3), jnp.float32)
    out3 = jax.block_until_ready(autoencoder_forward(x3, prepared3))
    ref3 = reference_forward(x3, params3)
    assert out3.shape == (8, input_dim3)
    assert jnp.allclose(out3, ref3, atol=2e-2, rtol=2e-2)

    print("KERNEL_OK")
</pallas_src>

<mosaic_0001>
module attributes {stable_mosaic.version = 11 : i64} {
  func.func @_autoencoder_kernel(%arg0: i32, %arg1: memref<16x256xf32, #tpu.memory_space<vmem>>, %arg2: memref<256x128xbf16, #tpu.memory_space<vmem>>, %arg3: memref<1x128xf32, #tpu.memory_space<vmem>>, %arg4: memref<128x64xbf16, #tpu.memory_space<vmem>>, %arg5: memref<1x64xf32, #tpu.memory_space<vmem>>, %arg6: memref<64x64xbf16, #tpu.memory_space<vmem>>, %arg7: memref<1x64xf32, #tpu.memory_space<vmem>>, %arg8: memref<64x128xbf16, #tpu.memory_space<vmem>>, %arg9: memref<1x128xf32, #tpu.memory_space<vmem>>, %arg10: memref<128x256xbf16, #tpu.memory_space<vmem>>, %arg11: memref<1x256xf32, #tpu.memory_space<vmem>>, %arg12: memref<16x256xf32, #tpu.memory_space<vmem>>) attributes {dimension_semantics = [#tpu.dimension_semantics<parallel>], iteration_bounds = array<i64: 1>, scalar_prefetch = 0 : i64, scratch_operands = 0 : i64, tpu.core_type = #tpu.core_type<tc>, window_params = [{transform_indices = @transform_0, window_bounds = array<i64: 16, 256>}, {pipeline_mode = #tpu.pipeline_mode<synchronous>, transform_indices = @transform_1, window_bounds = array<i64: 256, 128>}, {pipeline_mode = #tpu.pipeline_mode<synchronous>, transform_indices = @transform_2, window_bounds = array<i64: 1, 128>}, {pipeline_mode = #tpu.pipeline_mode<synchronous>, transform_indices = @transform_3, window_bounds = array<i64: 128, 64>}, {pipeline_mode = #tpu.pipeline_mode<synchronous>, transform_indices = @transform_4, window_bounds = array<i64: 1, 64>}, {pipeline_mode = #tpu.pipeline_mode<synchronous>, transform_indices = @transform_5, window_bounds = array<i64: 64, 64>}, {pipeline_mode = #tpu.pipeline_mode<synchronous>, transform_indices = @transform_6, window_bounds = array<i64: 1, 64>}, {pipeline_mode = #tpu.pipeline_mode<synchronous>, transform_indices = @transform_7, window_bounds = array<i64: 64, 128>}, {pipeline_mode = #tpu.pipeline_mode<synchronous>, transform_indices = @transform_8, window_bounds = array<i64: 1, 128>}, {pipeline_mode = #tpu.pipeline_mode<synchronous>, transform_indices = @transform_9, window_bounds = array<i64: 128, 256>}, {pipeline_mode = #tpu.pipeline_mode<synchronous>, transform_indices = @transform_10, window_bounds = array<i64: 1, 256>}, {transform_indices = @transform_11, window_bounds = array<i64: 16, 256>}]} {
    %c0 = arith.constant 0 : index
    %c0_0 = arith.constant 0 : index
    %0 = vector.load %arg1[%c0, %c0_0] : memref<16x256xf32, #tpu.memory_space<vmem>>, vector<16x256xf32>
    %1 = arith.truncf %0 : vector<16x256xf32> to vector<16x256xbf16>
    %c0_1 = arith.constant 0 : index
    %c0_2 = arith.constant 0 : index
    %2 = vector.load %arg2[%c0_1, %c0_2] : memref<256x128xbf16, #tpu.memory_space<vmem>>, vector<256x128xbf16>
    %cst = arith.constant dense<0.000000e+00> : vector<16x128xf32>
    %3 = tpu.matmul %1, %2, %cst {dimension_numbers = #tpu.dot_dimension_numbers<[1], [0], [0], [1], [0, 0, 1, 1], [], []>} : vector<16x256xbf16>, vector<256x128xbf16>, vector<16x128xf32> -> vector<16x128xf32>
    %c0_3 = arith.constant 0 : index
    %c0_4 = arith.constant 0 : index
    %4 = vector.load %arg3[%c0_3, %c0_4] : memref<1x128xf32, #tpu.memory_space<vmem>>, vector<1x128xf32>
    %5 = vector.broadcast %4 : vector<1x128xf32> to vector<16x128xf32>
    %6 = arith.addf %3, %5 : vector<16x128xf32>
    %cst_5 = arith.constant 0.000000e+00 : f32
    %7 = vector.broadcast %cst_5 : f32 to vector<16x128xf32>
    %8 = arith.maximumf %6, %7 : vector<16x128xf32>
    %9 = arith.truncf %8 : vector<16x128xf32> to vector<16x128xbf16>
    %c0_6 = arith.constant 0 : index
    %c0_7 = arith.constant 0 : index
    %10 = vector.load %arg4[%c0_6, %c0_7] : memref<128x64xbf16, #tpu.memory_space<vmem>>, vector<128x64xbf16>
    %cst_8 = arith.constant dense<0.000000e+00> : vector<16x64xf32>
    %11 = tpu.matmul %9, %10, %cst_8 {dimension_numbers = #tpu.dot_dimension_numbers<[1], [0], [0], [1], [0, 0, 1, 1], [], []>} : vector<16x128xbf16>, vector<128x64xbf16>, vector<16x64xf32> -> vector<16x64xf32>
    %c0_9 = arith.constant 0 : index
    %c0_10 = arith.constant 0 : index
    %12 = vector.load %arg5[%c0_9, %c0_10] : memref<1x64xf32, #tpu.memory_space<vmem>>, vector<1x64xf32>
    %13 = vector.broadcast %12 : vector<1x64xf32> to vector<16x64xf32>
    %14 = arith.addf %11, %13 : vector<16x64xf32>
    %cst_11 = arith.constant 0.000000e+00 : f32
    %15 = vector.broadcast %cst_11 : f32 to vector<16x64xf32>
    %16 = arith.maximumf %14, %15 : vector<16x64xf32>
    %17 = arith.truncf %16 : vector<16x64xf32> to vector<16x64xbf16>
    %c0_12 = arith.constant 0 : index
    %c0_13 = arith.constant 0 : index
    %18 = vector.load %arg6[%c0_12, %c0_13] : memref<64x64xbf16, #tpu.memory_space<vmem>>, vector<64x64xbf16>
    %cst_14 = arith.constant dense<0.000000e+00> : vector<16x64xf32>
    %19 = tpu.matmul %17, %18, %cst_14 {dimension_numbers = #tpu.dot_dimension_numbers<[1], [0], [0], [1], [0, 0, 1, 1], [], []>} : vector<16x64xbf16>, vector<64x64xbf16>, vector<16x64xf32> -> vector<16x64xf32>
    %c0_15 = arith.constant 0 : index
    %c0_16 = arith.constant 0 : index
    %20 = vector.load %arg7[%c0_15, %c0_16] : memref<1x64xf32, #tpu.memory_space<vmem>>, vector<1x64xf32>
    %21 = vector.broadcast %20 : vector<1x64xf32> to vector<16x64xf32>
    %22 = arith.addf %19, %21 : vector<16x64xf32>
    %cst_17 = arith.constant 0.000000e+00 : f32
    %23 = vector.broadcast %cst_17 : f32 to vector<16x64xf32>
    %24 = arith.maximumf %22, %23 : vector<16x64xf32>
    %25 = arith.truncf %24 : vector<16x64xf32> to vector<16x64xbf16>
    %c0_18 = arith.constant 0 : index
    %c0_19 = arith.constant 0 : index
    %26 = vector.load %arg8[%c0_18, %c0_19] : memref<64x128xbf16, #tpu.memory_space<vmem>>, vector<64x128xbf16>
    %cst_20 = arith.constant dense<0.000000e+00> : vector<16x128xf32>
    %27 = tpu.matmul %25, %26, %cst_20 {dimension_numbers = #tpu.dot_dimension_numbers<[1], [0], [0], [1], [0, 0, 1, 1], [], []>} : vector<16x64xbf16>, vector<64x128xbf16>, vector<16x128xf32> -> vector<16x128xf32>
    %c0_21 = arith.constant 0 : index
    %c0_22 = arith.constant 0 : index
    %28 = vector.load %arg9[%c0_21, %c0_22] : memref<1x128xf32, #tpu.memory_space<vmem>>, vector<1x128xf32>
    %29 = vector.broadcast %28 : vector<1x128xf32> to vector<16x128xf32>
    %30 = arith.addf %27, %29 : vector<16x128xf32>
    %cst_23 = arith.constant 0.000000e+00 : f32
    %31 = vector.broadcast %cst_23 : f32 to vector<16x128xf32>
    %32 = arith.maximumf %30, %31 : vector<16x128xf32>
    %33 = arith.truncf %32 : vector<16x128xf32> to vector<16x128xbf16>
    %c0_24 = arith.constant 0 : index
    %c0_25 = arith.constant 0 : index
    %34 = vector.load %arg10[%c0_24, %c0_25] : memref<128x256xbf16, #tpu.memory_space<vmem>>, vector<128x256xbf16>
    %cst_26 = arith.constant dense<0.000000e+00> : vector<16x256xf32>
    %35 = tpu.matmul %33, %34, %cst_26 {dimension_numbers = #tpu.dot_dimension_numbers<[1], [0], [0], [1], [0, 0, 1, 1], [], []>} : vector<16x128xbf16>, vector<128x256xbf16>, vector<16x256xf32> -> vector<16x256xf32>
    %c0_27 = arith.constant 0 : index
    %c0_28 = arith.constant 0 : index
    %36 = vector.load %arg11[%c0_27, %c0_28] : memref<1x256xf32, #tpu.memory_space<vmem>>, vector<1x256xf32>
    %37 = vector.broadcast %36 : vector<1x256xf32> to vector<16x256xf32>
    %38 = arith.addf %35, %37 : vector<16x256xf32>
    %cst_29 = arith.constant 0.000000e+00 : f32
    %39 = vector.broadcast %cst_29 : f32 to vector<16x256xf32>
    %40 = arith.subf %39, %38 : vector<16x256xf32>
    %41 = math.exp %40 : vector<16x256xf32>
    %cst_30 = arith.constant 1.000000e+00 : f32
    %42 = vector.broadcast %cst_30 : f32 to vector<16x256xf32>
    %43 = arith.addf %42, %41 : vector<16x256xf32>
    %44 = tpu.reciprocal %43 {approx = true} : vector<16x256xf32> -> vector<16x256xf32>
    %c0_31 = arith.constant 0 : index
    %c0_32 = arith.constant 0 : index
    %45 = vector.load %arg12[%c0_31, %c0_32] : memref<16x256xf32, #tpu.memory_space<vmem>>, vector<16x256xf32>
    tpu.vector_store %arg12[%c0_31, %c0_32], %44 {strides = array<i32>} : memref<16x256xf32, #tpu.memory_space<vmem>>, vector<16x256xf32>,
    return
  }
  func.func @transform_0(%arg0: i32) -> (i32, i32) {
    %c0_i32 = arith.constant 0 : i32
    %c0_i32_0 = arith.constant 0 : i32
    return %arg0, %c0_i32 : i32, i32
  }
  func.func @transform_1(%arg0: i32) -> (i32, i32) {
    %c0_i32 = arith.constant 0 : i32
    %c0_i32_0 = arith.constant 0 : i32
    %c0_i32_1 = arith.constant 0 : i32
    return %c0_i32, %c0_i32_0 : i32, i32
  }
  func.func @transform_2(%arg0: i32) -> (i32, i32) {
    %c0_i32 = arith.constant 0 : i32
    %c0_i32_0 = arith.constant 0 : i32
    %c0_i32_1 = arith.constant 0 : i32
    return %c0_i32, %c0_i32_0 : i32, i32
  }
  func.func @transform_3(%arg0: i32) -> (i32, i32) {
    %c0_i32 = arith.constant 0 : i32
    %c0_i32_0 = arith.constant 0 : i32
    %c0_i32_1 = arith.constant 0 : i32
    return %c0_i32, %c0_i32_0 : i32, i32
  }
  func.func @transform_4(%arg0: i32) -> (i32, i32) {
    %c0_i32 = arith.constant 0 : i32
    %c0_i32_0 = arith.constant 0 : i32
    %c0_i32_1 = arith.constant 0 : i32
    return %c0_i32, %c0_i32_0 : i32, i32
  }
  func.func @transform_5(%arg0: i32) -> (i32, i32) {
    %c0_i32 = arith.constant 0 : i32
    %c0_i32_0 = arith.constant 0 : i32
    %c0_i32_1 = arith.constant 0 : i32
    return %c0_i32, %c0_i32_0 : i32, i32
  }
  func.func @transform_6(%arg0: i32) -> (i32, i32) {
    %c0_i32 = arith.constant 0 : i32
    %c0_i32_0 = arith.constant 0 : i32
    %c0_i32_1 = arith.constant 0 : i32
    return %c0_i32, %c0_i32_0 : i32, i32
  }
  func.func @transform_7(%arg0: i32) -> (i32, i32) {
    %c0_i32 = arith.constant 0 : i32
    %c0_i32_0 = arith.constant 0 : i32
    %c0_i32_1 = arith.constant 0 : i32
    return %c0_i32, %c0_i32_0 : i32, i32
  }
  func.func @transform_8(%arg0: i32) -> (i32, i32) {
    %c0_i32 = arith.constant 0 : i32
    %c0_i32_0 = arith.constant 0 : i32
    %c0_i32_1 = arith.constant 0 : i32
    return %c0_i32, %c0_i32_0 : i32, i32
  }
  func.func @transform_9(%arg0: i32) -> (i32, i32) {
    %c0_i32 = arith.constant 0 : i32
    %c0_i32_0 = arith.constant 0 : i32
    %c0_i32_1 = arith.constant 0 : i32
    return %c0_i32, %c0_i32_0 : i32, i32
  }
  func.func @transform_10(%arg0: i32) -> (i32, i32) {
    %c0_i32 = arith.constant 0 : i32
    %c0_i32_0 = arith.constant 0 : i32
    %c0_i32_1 = arith.constant 0 : i32
    return %c0_i32, %c0_i32_0 : i32, i32
  }
  func.func @transform_11(%arg0: i32) -> (i32, i32) {
    %c0_i32 = arith.constant 0 : i32
    %c0_i32_0 = arith.constant 0 : i32
    return %arg0, %c0_i32 : i32, i32
  }
}

</mosaic_0001>

<bundles_post_ra>
// kernel: tpu_custom_call.1
= control target key start
LH: loop header
LB: loop body
LE: loop exit
PB: predicated region body
PF: predicated region fallthrough
CT: control target
= control target key end

     0   :  { %16 = vsyncpa [#allocation3], 0  ;;  %s1552_s0 = inlined_call_operand.hbm [shape: f32[16,256], index: 0, kind: input, shape index: {}]   ;;  %s1553_s1 = inlined_call_operand.hbm [shape: bf16[256,128], index: 1, kind: input, shape index: {}]   ;;  %s1554_s2 = inlined_call_operand.hbm [shape: f32[1,128], index: 2, kind: input, shape index: {}]   ;;  %s1555_s3 = inlined_call_operand.vmem [shape: bf16[128,64], index: 3, kind: input, shape index: {}]   ;;  %s1556_s4 = inlined_call_operand.hbm [shape: f32[1,64], index: 4, kind: input, shape index: {}]   ;;  %s1557_s5 = inlined_call_operand.hbm [shape: bf16[64,64], index: 5, kind: input, shape index: {}]   ;;  %s1558_s6 = inlined_call_operand.hbm [shape: f32[1,64], index: 6, kind: input, shape index: {}]   ;;  %s1559_s7 = inlined_call_operand.hbm [shape: bf16[64,128], index: 7, kind: input, shape index: {}]   ;;  %s1560_s8 = inlined_call_operand.hbm [shape: f32[1,128], index: 8, kind: input, shape index: {}]   ;;  %s1561_s9 = inlined_call_operand.vmem [shape: bf16[128,256], index: 9, kind: input, shape index: {}]   ;;  %s1562_s10 = inlined_call_operand.vmem [shape: f32[1,256], index: 10, kind: input, shape index: {}]   ;;  %s1563_s11 = inlined_call_operand.hbm [shape: f32[16,256], index: 11, kind: output, shape index: {}]  }
   0x1   :  { %17 = vsyncpa [#allocation6], 0 }
   0x2   :  { %18 = vsyncpa [#allocation9], 0 }
   0x3   :  { %19 = vsyncpa [#allocation12], 0 }
   0x4   :  { %20 = vsyncpa [#allocation15], 0 }
   0x5   :  { %21 = vsyncpa [#allocation4], 0  ;;  %s1247_s17 = smov [#allocation5]   ;;  %s1037_s21 = scalar_lea.hbm %s1553_s1, 2048 }
   0x6   :  { %s39_s18 = sshll.u32 %s1247_s17, 4  ;;  %p1038_p0 = scmp.ne.s32.totalorder %s1553_s1, %s1037_s21  ;;  %s40_s18 = int_to_ptr.vmem [resolvable:$true] %s39_s18 }
   0x7   :  { %p1041_p1 = scmp.lt.u32.totalorder %s1037_s21, %s1553_s1 }
   0x9   :  { %p1043_p2 = pnand %p1041_p1, %p1038_p0 }
   0xb   :  { %1046 = shalt.err (!%p1043_p2)
}
   0xc   :  { %s1047_s26 = scalar_lea.vmem %s40_s18, 2048  ;;  %p1052_p4 = scmp.lt.s32.totalorder %s40_s18, %s40_s18 }
   0xd   :  { %p1048_p3 = scmp.ne.s32.totalorder %s40_s18, %s1047_s26  ;;  %p1053_p5 = scmp.lt.s32.totalorder %s1047_s26, %s1047_s26 }
   0xf   :  { %p1054_p6 = por %p1053_p5, %p1052_p4 }
  0x11   :  { %p1055_p7 = pnand %p1054_p6, %p1048_p3 }
  0x13   :  { %1058 = shalt.err (!%p1055_p7)
}
  0x14   :  { %s1248_s27 = smov 64   ;;  %s1249_s28 = smov 4  }
  0x15   :  { %45 = dma.hbm_to_vmem [thread:$0]  %s1553_s1, 2048, %s40_s18, [#allocation6], %s1248_s27, %s1248_s27, %s1249_s28  }
  0x16   :  { %s1250_s12 = smov [#allocation8]   ;;  %s1251_s14 = smov [#allocation11]  }
  0x17   :  { %s64_s13 = sshll.u32 %s1250_s12, 4  ;;  %s86_s15 = sshll.u32 %s1251_s14, 4  ;;  %s65_s13 = int_to_ptr.vmem [resolvable:$true] %s64_s13  ;;  %s87_s15 = int_to_ptr.vmem [resolvable:$true] %s86_s15 }
  0x18   :  { %s1059_s19 = scalar_lea.hbm %s1556_s4, 16 }
  0x19   :  { %p1060_p8 = scmp.ne.s32.totalorder %s1556_s4, %s1059_s19  ;;  %p1063_p9 = scmp.lt.u32.totalorder %s1059_s19, %s1556_s4 }
  0x1b   :  { %p1065_p10 = pnand %p1063_p9, %p1060_p8 }
  0x1d   :  { %1068 = shalt.err (!%p1065_p10)
}
  0x1e   :  { %s1069_s1 = scalar_lea.vmem %s65_s13, 16  ;;  %s1073_s18 = scalar_lea.vmem %s65_s13, 32 }
  0x1f   :  { %p1070_p11 = scmp.ne.s32.totalorder %s65_s13, %s1069_s1  ;;  %p1074_p12 = scmp.lt.s32.totalorder %s65_s13, %s65_s13 }
  0x20   :  { %p1075_p13 = scmp.lt.s32.totalorder %s1073_s18, %s1069_s1 }
  0x22   :  { %p1076_p0 = por %p1075_p13, %p1074_p12 }
  0x24   :  { %p1077_p1 = pnand %p1076_p0, %p1070_p11 }
  0x26   :  { %1080 = shalt.err (!%p1077_p1)
}
  0x27   :  { %67 = dma.hbm_to_vmem [thread:$0]  %s1556_s4, 16, %s65_s13, [#allocation9]  }
  0x28   :  { %s1081_s30 = scalar_lea.hbm %s1558_s6, 16 }
  0x29   :  { %p1082_p2 = scmp.ne.s32.totalorder %s1558_s6, %s1081_s30  ;;  %p1085_p3 = scmp.lt.u32.totalorder %s1081_s30, %s1558_s6 }
  0x2b   :  { %p1087_p4 = pnand %p1085_p3, %p1082_p2 }
  0x2d   :  { %1090 = shalt.err (!%p1087_p4)
}
  0x2e   :  { %s1091_s19 = scalar_lea.vmem %s87_s15, 16  ;;  %s1095_s20 = scalar_lea.vmem %s87_s15, 32 }
  0x2f   :  { %p1092_p5 = scmp.ne.s32.totalorder %s87_s15, %s1091_s19  ;;  %p1096_p6 = scmp.lt.s32.totalorder %s87_s15, %s87_s15 }
  0x30   :  { %p1097_p7 = scmp.lt.s32.totalorder %s1095_s20, %s1091_s19 }
  0x32   :  { %p1098_p8 = por %p1097_p7, %p1096_p6 }
  0x34   :  { %p1099_p9 = pnand %p1098_p8, %p1092_p5 }
  0x36   :  { %1102 = shalt.err (!%p1099_p9)
}
  0x37   :  { %89 = dma.hbm_to_vmem [thread:$0]  %s1558_s6, 16, %s87_s15, [#allocation12]  }
  0x38   :  { %s1252_s21 = smov [#allocation2]   ;;  %s1103_s18 = scalar_lea.hbm %s1552_s0, 512 }
  0x39   :  { %s27_s22 = sshll.u32 %s1252_s21, 4  ;;  %p1104_p10 = scmp.ne.s32.totalorder %s1552_s0, %s1103_s18  ;;  %s28_s22 = int_to_ptr.vmem [resolvable:$true] %s27_s22 }
  0x3a   :  { %p1107_p11 = scmp.lt.u32.totalorder %s1103_s18, %s1552_s0 }
  0x3c   :  { %p1109_p12 = pnand %p1107_p11, %p1104_p10 }
  0x3e   :  { %1112 = shalt.err (!%p1109_p12)
}
  0x3f   :  { %s1113_s30 = scalar_lea.vmem %s28_s22, 512  ;;  %p1118_p0 = scmp.lt.s32.totalorder %s28_s22, %s28_s22 }
  0x40   :  { %p1114_p13 = scmp.ne.s32.totalorder %s28_s22, %s1113_s30  ;;  %p1119_p1 = scmp.lt.s32.totalorder %s1113_s30, %s1113_s30 }
  0x42   :  { %p1120_p2 = por %p1119_p1, %p1118_p0 }
  0x44   :  { %p1121_p3 = pnand %p1120_p2, %p1114_p13 }
  0x46   :  { %1124 = shalt.err (!%p1121_p3)
}
  0x47   :  { %s1253_s6 = smov 256   ;;  %s1254_s15 = smov 16  }
  0x48   :  { %33 = dma.hbm_to_vmem [thread:$0]  %s1552_s0, 512, %s28_s22, [#allocation3], %s1253_s6, %s1253_s6, %s1254_s15  }
  0x49   :  { %s1255_s16 = smov [#allocation7]   ;;  %s1256_s19 = smov [#allocation10]  }
  0x4a   :  { %s52_s17 = sshll.u32 %s1255_s16, 4  ;;  %s73_s20 = sshll.u32 %s1256_s19, 4  ;;  %s53_s17 = int_to_ptr.vmem [resolvable:$true] %s52_s17  ;;  %s1377_s20 = int_to_ptr.vmem [resolvable:$true] %s73_s20 }
  0x4b   :  { %s1125_s21 = scalar_lea.hbm %s1554_s2, 16 }
  0x4c   :  { %p1126_p4 = scmp.ne.s32.totalorder %s1554_s2, %s1125_s21  ;;  %p1129_p5 = scmp.lt.u32.totalorder %s1125_s21, %s1554_s2 }
  0x4e   :  { %p1131_p6 = pnand %p1129_p5, %p1126_p4 }
  0x50   :  { %1134 = shalt.err (!%p1131_p6)
}
  0x51   :  { %s1135_s0 = scalar_lea.vmem %s53_s17, 16  ;;  %s1139_s22 = scalar_lea.vmem %s53_s17, 32 }
  0x52   :  { %p1136_p7 = scmp.ne.s32.totalorder %s53_s17, %s1135_s0  ;;  %p1140_p8 = scmp.lt.s32.totalorder %s53_s17, %s53_s17 }
  0x53   :  { %p1141_p9 = scmp.lt.s32.totalorder %s1139_s22, %s1135_s0 }
  0x55   :  { %p1142_p10 = por %p1141_p9, %p1140_p8 }
  0x57   :  { %p1143_p11 = pnand %p1142_p10, %p1136_p7 }
  0x59   :  { %1146 = shalt.err (!%p1143_p11)
}
  0x5a   :  { %55 = dma.hbm_to_vmem [thread:$0]  %s1554_s2, 16, %s53_s17, [#allocation6]  }
  0x5b   :  { %s1147_s12 = scalar_lea.hbm %s1557_s5, 512 }
  0x5c   :  { %p1148_p12 = scmp.ne.s32.totalorder %s1557_s5, %s1147_s12  ;;  %p1151_p13 = scmp.lt.u32.totalorder %s1147_s12, %s1557_s5 }
  0x5e   :  { %p1153_p0 = pnand %p1151_p13, %p1148_p12 }
  0x60   :  { %1156 = shalt.err (!%p1153_p0)
}
  0x61   :  { %s1157_s13 = scalar_lea.vmem %s1377_s20, 512  ;;  %p1162_p2 = scmp.lt.s32.totalorder %s1377_s20, %s1377_s20 }
  0x62   :  { %p1158_p1 = scmp.ne.s32.totalorder %s1377_s20, %s1157_s13  ;;  %p1163_p3 = scmp.lt.s32.totalorder %s1157_s13, %s1157_s13 }
  0x64   :  { %p1164_p4 = por %p1163_p3, %p1162_p2 }
  0x66   :  { %p1165_p5 = pnand %p1164_p4, %p1158_p1 }
  0x68   :  { %1168 = shalt.err (!%p1165_p5)
}
  0x69   :  { %79 = dma.hbm_to_vmem [thread:$0]  %s1557_s5, 512, %s1377_s20, [#allocation9], %s1248_s27, %s1248_s27, %s1249_s28  }
  0x6a   :  { %s1257_s21 = smov [#allocation13]   ;;  %s1258_s1 = smov [#allocation14]  }
  0x6b   :  { %s95_s23 = sshll.u32 %s1257_s21, 4  ;;  %s108_s18 = sshll.u32 %s1258_s1, 4  ;;  %s96_s23 = int_to_ptr.vmem [resolvable:$true] %s95_s23  ;;  %s109_s18 = int_to_ptr.vmem [resolvable:$true] %s108_s18 }
  0x6c   :  { %s1169_s22 = scalar_lea.hbm %s1559_s7, 512 }
  0x6d   :  { %p1170_p6 = scmp.ne.s32.totalorder %s1559_s7, %s1169_s22  ;;  %p1173_p7 = scmp.lt.u32.totalorder %s1169_s22, %s1559_s7 }
  0x6f   :  { %p1175_p8 = pnand %p1173_p7, %p1170_p6 }
  0x71   :  { %1178 = shalt.err (!%p1175_p8)
}
  0x72   :  { %s1179_s5 = scalar_lea.vmem %s96_s23, 512  ;;  %p1184_p10 = scmp.lt.s32.totalorder %s96_s23, %s96_s23 }
  0x73   :  { %p1180_p9 = scmp.ne.s32.totalorder %s96_s23, %s1179_s5  ;;  %p1185_p11 = scmp.lt.s32.totalorder %s1179_s5, %s1179_s5 }
  0x75   :  { %p1186_p12 = por %p1185_p11, %p1184_p10 }
  0x77   :  { %p1187_p13 = pnand %p1186_p12, %p1180_p9 }
  0x79   :  { %1190 = shalt.err (!%p1187_p13)
}
  0x7a   :  { %101 = dma.hbm_to_vmem [thread:$0]  %s1559_s7, 512, %s96_s23, [#allocation12], %s1248_s27, %s1248_s27, %s1249_s28  }
  0x7b   :  { %s1191_s19 = scalar_lea.hbm %s1560_s8, 16 }
  0x7c   :  { %p1192_p0 = scmp.ne.s32.totalorder %s1560_s8, %s1191_s19  ;;  %p1195_p1 = scmp.lt.u32.totalorder %s1191_s19, %s1560_s8 }
  0x7e   :  { %p1197_p2 = pnand %p1195_p1, %p1192_p0 }
  0x80   :  { %1200 = shalt.err (!%p1197_p2)
}
  0x81   :  { %s1201_s21 = scalar_lea.vmem %s109_s18, 16  ;;  %s1205_s1 = scalar_lea.vmem %s109_s18, 32 }
  0x82   :  { %p1202_p3 = scmp.ne.s32.totalorder %s109_s18, %s1201_s21  ;;  %p1206_p4 = scmp.lt.s32.totalorder %s109_s18, %s109_s18 }
  0x83   :  { %p1207_p5 = scmp.lt.s32.totalorder %s1205_s1, %s1201_s21 }
  0x85   :  { %p1208_p6 = por %p1207_p5, %p1206_p4 }
  0x87   :  { %p1209_p7 = pnand %p1208_p6, %p1202_p3 }
  0x89   :  { %1212 = shalt.err (!%p1209_p7)
}
  0x8a   :  { %111 = dma.hbm_to_vmem [thread:$0]  %s1560_s8, 16, %s109_s18, [#allocation15]  }
  0x8b   :  { %1235 = dma.done.wait [#allocation3], 512  }
  0x8c   :  { %1236 = vsyncadd [#allocation3], 4294966784 }
  0x8d   :  { %1237 = dma.done.wait [#allocation6], 2064  }
  0x8e   :  { %1238 = vsyncadd [#allocation6], 4294965232 }
  0x8f   :  { %1239 = dma.done.wait [#allocation9], 528  }
  0x90   :  { %1240 = vsyncadd [#allocation9], 4294966768 }
  0x91   :  { %1241 = dma.done.wait [#allocation12], 528  }
  0x92   :  { %1242 = vsyncadd [#allocation12], 4294966768 }
  0x93   :  { %1243 = dma.done.wait [#allocation15], 16  }
  0x94   :  { %1244 = vsyncadd [#allocation15], 4294967280  ;;  %v1259_v0 = vmov 0.0   ;;  %v965_v1 = vld [vmem:[#allocation5 + $0x40] sm:$0xff]   ;;  %v967_v3 = vld [vmem:[#allocation5 + $0x48] sm:$0xff]   ;;  %vm1260_vm0 = vmmov 0  }
  0x95   :  { %905 = vmatprep.subr.bf16.mxu1 %v1259_v0  ;;  %v966_v2 = vld [vmem:[#allocation5] sm:$0xff]   ;;  %864 = vmatprep.subr.bf16.mxu0 %v965_v1  ;;  %v968_v4 = vld [vmem:[#allocation5 + $0x8] sm:$0xff]   ;;  %v969_v5 = vld [vmem:[#allocation5 + $0x50] sm:$0xff]   ;;  %vm480_vm1 = vcmask 523264  }
  0x96   :  { %865 = vmatpush3.bf16.msra.mxu0 %v966_v2  ;;  %v970_v6 = vld [vmem:[#allocation5 + $0x10] sm:$0xff]   ;;  %v971_v7 = vld [vmem:[#allocation5 + $0x58] sm:$0xff]   ;;  %v973_v9 = vld [vmem:[#allocation5 + $0x60] sm:$0xff]   ;;  %921 = vmatprep.mubr.msk.bf16.mxu1 %vm1260_vm0, %v1259_v0 }
  0x97   :  { %866 = vmatprep.subr.bf16.mxu0 %v967_v3  ;;  %v972_v8 = vld [vmem:[#allocation5 + $0x18] sm:$0xff]   ;;  %v974_v10 = vld [vmem:[#allocation5 + $0x20] sm:$0xff]   ;;  %v975_v11 = vld [vmem:[#allocation5 + $0x68] sm:$0xff]  }
  0x98   :  { %v142_v12 = vld [vmem:[#allocation2 + $0x8] sm:$0xff]  ;;  %v144_v13 = vld [vmem:[#allocation2 + $0x18] sm:$0xff]  ;;  %v981_v16 = vld [vmem:[%s1555_s3] sm:$0xff]  }
  0x99   :  { %v976_v14 = vld [vmem:[#allocation5 + $0x28] sm:$0xff]   ;;  %v146_v15 = vpack.c.bf16 %v144_v13, %v142_v12  ;;  %v977_v17 = vld [vmem:[#allocation5 + $0x70] sm:$0xff]   ;;  %906 = vmatpush3.bf16.msra.mxu1 %v981_v16  ;;  %v979_v20 = vld [vmem:[#allocation5 + $0x78] sm:$0xff]  }
  0x9a   :  { %867 = vmatpush3.bf16.msra.mxu0 %v968_v4  ;;  %v982_v18 = vld [vmem:[%s1555_s3 + $0x8] sm:$0xff]   ;;  %v978_v19 = vld [vmem:[#allocation5 + $0x30] sm:$0xff]   ;;  %907 = vmatprep.subr.bf16.mxu1 %v1259_v0  ;;  %v980_v22 = vld [vmem:[#allocation5 + $0x38] sm:$0xff]  }
  0x9b   :  { %868 = vmatprep.subr.bf16.mxu0 %v969_v5  ;;  %314 = vmatprep.mubr.bf16.mxu0 %v146_v15  ;;  %v983_v21 = vld [vmem:[%s1555_s3 + $0x10] sm:$0xff]   ;;  %v141_v23 = vld [vmem:[#allocation2] sm:$0xff]  ;;  %v984_v25 = vld [vmem:[%s1555_s3 + $0x18] sm:$0xff]  }
  0x9c   :  { %v143_v24 = vld [vmem:[#allocation2 + $0x10] sm:$0xff]  ;;  %v985_v27 = vld [vmem:[%s1555_s3 + $0x20] sm:$0xff]   ;;  %v986_v28 = vld [vmem:[%s1555_s3 + $0x28] sm:$0xff]  }
  0x9d   :  { %908 = vmatpush3.bf16.msra.mxu1 %v982_v18  ;;  %v145_v26 = vpack.c.bf16 %v143_v24, %v141_v23  ;;  %v987_v29 = vld [vmem:[%s1555_s3 + $0x30] sm:$0xff]   ;;  %v988_v30 = vld [vmem:[%s1555_s3 + $0x38] sm:$0xff]   ;;  %v810_v32 = vld [vmem:[#allocation7] ss:$0 sm:$0xff]  ;;  %v1261_v23 = vmov 0  }
  0x9e   :  { %869 = vmatpush3.bf16.msra.mxu0 %v970_v6  ;;  %909 = vmatprep.subr.bf16.mxu1 %v1259_v0  ;;  %v989_v42 = vld [vmem:[#allocation10] sm:$0xff]   ;;  %v990_v44 = vld [vmem:[#allocation10 + $0x8] sm:$0xff]   ;;  %v991_v45 = vld [vmem:[#allocation10 + $0x10] sm:$0xff]  }
  0x9f   :  { %870 = vmatprep.subr.bf16.mxu0 %v971_v7  ;;  %v992_v46 = vld [vmem:[#allocation10 + $0x18] sm:$0xff]   ;;  %v993_v56 = vld [vmem:[#allocation13] sm:$0xff]   ;;  %v994_v58 = vld [vmem:[#allocation13 + $0x8] sm:$0xff]  }
  0xa0   :  { %v827_v47 = vld [vmem:[#allocation8] ss:$0 sm:$0xff]  ;;  %v995_v59 = vld [vmem:[#allocation13 + $0x10] sm:$0xff]   ;;  %v999_v62 = vld [vmem:[%s1561_s9 + $0x4] ss:$8 sps:$4 sm:$0xff]  }
  0xa1   :  { %910 = vmatpush3.bf16.msra.mxu1 %v983_v21  ;;  %v996_v60 = vld [vmem:[#allocation13 + $0x18] sm:$0xff]   ;;  %v1006_v4 = vld [vmem:[%s1561_s9 + $0x30] ss:$8 sps:$4 sm:$0xff]   ;;  %v842_v24 = vld [vmem:[#allocation14] ss:$0 sm:$0xff] }
  0xa2   :  { %871 = vmatpush3.bf16.msra.mxu0 %v972_v8  ;;  %911 = vmatprep.subr.bf16.mxu1 %v1259_v0  ;;  %v997_v61 = vld [vmem:[%s1561_s9] ss:$8 sps:$4 sm:$0xff]   ;;  %v1002_v63 = vld [vmem:[%s1561_s9 + $0x14] ss:$8 sps:$4 sm:$0xff]   ;;  %v1005_v1 = vld [vmem:[%s1561_s9 + $0x24] ss:$8 sps:$4 sm:$0xff]  }
  0xa3   :  { %872 = vmatprep.subr.bf16.mxu0 %v973_v9  ;;  %v1003_v2 = vld [vmem:[%s1561_s9 + $0x20] ss:$8 sps:$4 sm:$0xff]   ;;  %v1008_v3 = vld [vmem:[%s1561_s9 + $0x34] ss:$8 sps:$4 sm:$0xff]   ;;  %v1011_v5 = vld [vmem:[%s1561_s9 + $0x44] ss:$8 sps:$4 sm:$0xff]  }
  0xa4   :  { %v1009_v6 = vld [vmem:[%s1561_s9 + $0x40] ss:$8 sps:$4 sm:$0xff]   ;;  %v1014_v7 = vld [vmem:[%s1561_s9 + $0x54] ss:$8 sps:$4 sm:$0xff]   ;;  %v1012_v8 = vld [vmem:[%s1561_s9 + $0x50] ss:$8 sps:$4 sm:$0xff]  }
  0xa5   :  { %912 = vmatpush3.bf16.msra.mxu1 %v984_v25  ;;  %v836_v9 = vld [vmem:[#allocation11] ss:$0 sm:$0xff]  ;;  %v1020_v21 = vld [vmem:[%s1561_s9 + $0x74] ss:$8 sps:$4 sm:$0xff]  }
  0xa6   :  { %873 = vmatpush3.bf16.msra.mxu0 %v974_v10  ;;  %913 = vmatprep.subr.bf16.mxu1 %v1259_v0 }
  0xa7   :  { %874 = vmatprep.subr.bf16.mxu0 %v975_v11 }
  0xa9   :  { %914 = vmatpush3.bf16.msra.mxu1 %v985_v27 }
  0xaa   :  { %875 = vmatpush3.bf16.msra.mxu0 %v976_v14  ;;  %915 = vmatprep.subr.bf16.mxu1 %v1259_v0 }
  0xab   :  { %876 = vmatprep.subr.bf16.mxu0 %v977_v17 }
  0xad   :  { %916 = vmatpush3.bf16.msra.mxu1 %v986_v28 }
  0xae   :  { %877 = vmatpush3.bf16.msra.mxu0 %v978_v19  ;;  %917 = vmatprep.subr.bf16.mxu1 %v1259_v0  ;;  %v1017_v19 = vld [vmem:[%s1561_s9 + $0x64] ss:$8 sps:$4 sm:$0xff]  }
  0xaf   :  { %878 = vmatprep.subr.bf16.mxu0 %v979_v20  ;;  %v1015_v20 = vld [vmem:[%s1561_s9 + $0x60] ss:$8 sps:$4 sm:$0xff]  }
  0xb1   :  { %918 = vmatpush3.bf16.msra.mxu1 %v987_v29 }
  0xb2   :  { %879 = vmatpush3.bf16.msra.mxu0 %v980_v22  ;;  %919 = vmatprep.subr.bf16.mxu1 %v1259_v0  ;;  %v1018_v22 = vld [vmem:[%s1561_s9 + $0x70] ss:$8 sps:$4 sm:$0xff]  }
  0xb3   :  { %722 = vmatprep.subr.bf16.mxu0 %v999_v62 }
  0xb5   :  { %315 = vmatmul.mubr.bf16.vlgmr.msra.gmra.mrb[0].mxu0 %v145_v26  ;;  %920 = vmatpush3.bf16.msra.mxu1 %v988_v30 }
  0xb6   :  { %925 = vmatprep.subr.bf16.mxu1 %v1259_v0  ;;  %723 = vmatpush1.bf16.msra.mxu0 %v997_v61 }
  0xb7   :  { %724 = vmatprep.subr.bf16.mxu0 %v1002_v63  ;;  %754 = vmatprep.mubr.bf16.mxu0 %v1261_v23 }
 0x188   :  { %v880_v31 = vpop.f32.mrb[0].mxu0 }
 0x189   :  { %v881_v33 = vpop.f32.mrb[1].mxu0 }
 0x18a   :  { %v882_v34 = vadd.f32 %v881_v33, %v880_v31  ;;  %v883_v35 = vpop.f32.mrb[2].mxu0 }
 0x18b   :  { %v884_v36 = vpop.f32.mrb[3].mxu0 }
 0x18c   :  { %v317_v37 = vadd.f32 %v882_v34, %v810_v32  ;;  %v885_v38 = vadd.f32 %v884_v36, %v883_v35  ;;  %v632_v34 = vlaneseq }
 0x18e   :  { %v320_v39 = vadd.f32 %v885_v38, %v810_v32  ;;  %v323_v40 = vmax.f32 %v317_v37, 0.0  ;;  %v633_v35 = vshrl.u32 %v632_v34, 7  ;;  %v630_v37 = vld [vmem:[%s1562_s10] sm:$0x3]  ;;  %s1262_s10 = smov [#allocation16]  }
 0x18f   :  { %s794_s1 = sshll.u32 %s1262_s10, 4  ;;  %s795_s1 = int_to_ptr.vmem [resolvable:$true] %s794_s1 }
 0x190   :  { %v324_v41 = vmax.f32 %v320_v39, 0.0  ;;  %v634_v36 = vsub.s32 0, %v633_v35  ;;  %v638_v38 = vsub.s32 1, %v633_v35  ;;  %s1213_s7 = scalar_lea.vmem %s795_s1, 512  ;;  %p1218_p9 = scmp.lt.s32.totalorder %s795_s1, %s795_s1 }
 0x191   :  { %p1214_p8 = scmp.ne.s32.totalorder %s795_s1, %s1213_s7  ;;  %p1219_p10 = scmp.lt.s32.totalorder %s1213_s7, %s1213_s7 }
 0x192   :  { %v325_v43 = vpack.c.bf16 %v324_v41, %v323_v40  ;;  %v635_v39 = vrot.slane %v630_v37, %v634_v36  ;;  %v639_v40 = vrot.slane %v630_v37, %v638_v38 }
 0x193   :  { %p1220_p11 = por %p1219_p10, %p1218_p9 }
 0x194   :  { %922 = vmatmul.mubr.bf16.vlgmr.msra.gmra.mrb[0].mxu1 %v325_v43 }
 0x195   :  { %926 = vmatpush3.bf16.msra.mxu1 %v989_v42  ;;  %933 = vmatprep.mubr.msk.bf16.mxu1 %vm1260_vm0, %v1259_v0  ;;  %p1221_p12 = pnand %p1220_p11, %p1214_p8 }
 0x196   :  { %927 = vmatprep.subr.bf16.mxu1 %v1259_v0 }
 0x199   :  { %928 = vmatpush3.bf16.msra.mxu1 %v990_v44 }
 0x19a   :  { %929 = vmatprep.subr.bf16.mxu1 %v1259_v0 }
 0x19d   :  { %930 = vmatpush3.bf16.msra.mxu1 %v991_v45 }
 0x19e   :  { %931 = vmatprep.subr.bf16.mxu1 %v1259_v0 }
 0x1a1   :  { %932 = vmatpush3.bf16.msra.mxu1 %v992_v46 }
 0x1a2   :  { %937 = vmatprep.subr.bf16.mxu1 %v1259_v0 }
 0x267   :  { %v431_v48 = vpop.f32.mrb[0].mxu1 }
 0x268   :  { %v432_v49 = vadd.f32 %v827_v47, %v431_v48  ;;  %v923_v50 = vpop.f32.mrb[1].mxu1 }
 0x269   :  { %v434_v51 = vpop.f32.mrb[2].mxu1 }
 0x26a   :  { %v435_v52 = vadd.f32 %v827_v47, %v434_v51  ;;  %v924_v53 = vpop.f32.mrb[3].mxu1  ;;  %v438_v54 = vmax.f32 %v432_v49, 0.0 }
 0x26c   :  { %v439_v55 = vmax.f32 %v435_v52, 0.0 }
 0x26e   :  { %v440_v57 = vpack.c.bf16 %v439_v55, %v438_v54 }
 0x270   :  { %934 = vmatmul.mubr.msk.bf16.vlgmr.msra.gmra.mrb[4].mxu1 %vm480_vm1, %v440_v57 }
 0x271   :  { %938 = vmatpush3.bf16.msra.mxu1 %v993_v56  ;;  %945 = vmatprep.mubr.msk.bf16.mxu1 %vm1260_vm0, %v1259_v0 }
 0x272   :  { %939 = vmatprep.subr.bf16.mxu1 %v1259_v0 }
 0x275   :  { %940 = vmatpush3.bf16.msra.mxu1 %v994_v58 }
 0x276   :  { %941 = vmatprep.subr.bf16.mxu1 %v1259_v0 }
 0x279   :  { %942 = vmatpush3.bf16.msra.mxu1 %v995_v59 }
 0x27a   :  { %943 = vmatprep.subr.bf16.mxu1 %v1259_v0  ;;  %v1000_v0 = vld [vmem:[%s1561_s9 + $0x10] ss:$8 sps:$4 sm:$0xff]  }
 0x27b   :  { %725 = vmatpush1.bf16.msra.mxu0 %v1000_v0 }
 0x27c   :  { %726 = vmatprep.subr.bf16.mxu0 %v1005_v1 }
 0x27d   :  { %944 = vmatpush3.bf16.msra.mxu1 %v996_v60 }
 0x27f   :  { %727 = vmatpush1.bf16.msra.mxu0 %v1003_v2 }
 0x280   :  { %728 = vmatprep.subr.bf16.mxu0 %v1008_v3 }
 0x283   :  { %729 = vmatpush1.bf16.msra.mxu0 %v1006_v4 }
 0x284   :  { %730 = vmatprep.subr.bf16.mxu0 %v1011_v5 }
 0x287   :  { %731 = vmatpush1.bf16.msra.mxu0 %v1009_v6 }
 0x288   :  { %732 = vmatprep.subr.bf16.mxu0 %v1014_v7 }
 0x28b   :  { %733 = vmatpush1.bf16.msra.mxu0 %v1012_v8 }
 0x28c   :  { %734 = vmatprep.subr.bf16.mxu0 %v1017_v19 }
 0x28f   :  { %735 = vmatpush1.bf16.msra.mxu0 %v1015_v20 }
 0x290   :  { %736 = vmatprep.subr.bf16.mxu0 %v1020_v21 }
 0x293   :  { %737 = vmatpush1.bf16.msra.mxu0 %v1018_v22 }
 0x343   :  { %v518_v10 = vpop.f32.mrb[4].mxu1 }
 0x344   :  { %v519_v11 = vadd.f32 %v836_v9, %v518_v10  ;;  %v935_v12 = vpop.f32.mrb[5].mxu1 }
 0x345   :  { %v521_v13 = vpop.f32.mrb[6].mxu1 }
 0x346   :  { %v522_v14 = vadd.f32 %v836_v9, %v521_v13  ;;  %v936_v15 = vpop.f32.mrb[7].mxu1  ;;  %v525_v16 = vmax.f32 %v519_v11, 0.0 }
 0x348   :  { %v526_v17 = vmax.f32 %v522_v14, 0.0 }
 0x34a   :  { %v527_v18 = vpack.c.bf16 %v526_v17, %v525_v16 }
 0x34c   :  { %946 = vmatmul.mubr.msk.bf16.vlgmr.msra.gmra.mrb[8].mxu1 %vm480_vm1, %v527_v18 }
 0x41f   :  { %v604_v25 = vpop.f32.mrb[8].mxu1 }
 0x420   :  { %v605_v26 = vadd.f32 %v842_v24, %v604_v25  ;;  %v947_v27 = vpop.f32.mrb[9].mxu1 }
 0x421   :  { %v607_v28 = vpop.f32.mrb[10].mxu1 }
 0x422   :  { %v608_v29 = vadd.f32 %v842_v24, %v607_v28  ;;  %v948_v30 = vpop.f32.mrb[11].mxu1  ;;  %v611_v31 = vmax.f32 %v605_v26, 0.0 }
 0x424   :  { %v612_v32 = vmax.f32 %v608_v29, 0.0 }
 0x426   :  { %v613_v33 = vpack.c.bf16 %v612_v32, %v611_v31 }
 0x428   :  { %755 = vmatmul.mubr.bf16.vlgmr.msra.gmra.mrb[4].mxu0 %v613_v33 }
 0x4fb   :  { %v756_v41 = vpop.f32.mrb[4].mxu0 }
 0x4fc   :  { %v757_v42 = vadd.f32 %v756_v41, %v635_v39  ;;  %v758_v43 = vpop.f32.mrb[5].mxu0 }
 0x4fd   :  { %v759_v44 = vadd.f32 %v758_v43, %v639_v40  ;;  %v760_v45 = vpop.f32.mrb[6].mxu0 }
 0x4fe   :  { %v765_v46 = vsub.f32 0.0, %v757_v42  ;;  %v761_v47 = vadd.f32 %v760_v45, %v635_v39  ;;  %v762_v48 = vpop.f32.mrb[7].mxu0 }
 0x4ff   :  { %v766_v49 = vsub.f32 0.0, %v759_v44  ;;  %v763_v50 = vadd.f32 %v762_v48, %v639_v40 }
 0x500   :  { %v769_v51 = vmul.f32 1.442695, %v765_v46  ;;  %v767_v52 = vsub.f32 0.0, %v761_v47 }
 0x501   :  { %v771_v53 = vmul.f32 1.442695, %v766_v49  ;;  %v768_v54 = vsub.f32 0.0, %v763_v50 }
 0x502   :  { %1021 = vpow2.f32 %v769_v51  ;;  %v773_v55 = vmul.f32 1.442695, %v767_v52 }
 0x503   :  { %1023 = vpow2.f32 %v771_v53  ;;  %v775_v56 = vmul.f32 1.442695, %v768_v54 }
 0x504   :  { %1025 = vpow2.f32 %v773_v55 }
 0x505   :  { %1027 = vpow2.f32 %v775_v56 }
 0x50c   :  { %v1022_v57 = vpop.eup %1021 }
 0x50d   :  { %v1024_v58 = vpop.eup %1023  ;;  %v777_v59 = vadd.f32 1.0, %v1022_v57 }
 0x50e   :  { %v1026_v60 = vpop.eup %1025  ;;  %v778_v61 = vadd.f32 1.0, %v1024_v58 }
 0x50f   :  { %v1028_v62 = vpop.eup %1027  ;;  %1029 = vrcp.f32 %v777_v59  ;;  %v779_v63 = vadd.f32 1.0, %v1026_v60 }
 0x510   :  { %1031 = vrcp.f32 %v778_v61  ;;  %v780_v0 = vadd.f32 1.0, %v1028_v62 }
 0x511   :  { %1033 = vrcp.f32 %v779_v63 }
 0x512   :  { %1035 = vrcp.f32 %v780_v0 }
 0x519   :  { %v1030_v1 = vpop.eup %1029 }
 0x51a   :  { %v1032_v2 = vpop.eup %1031  ;;  %785 = vst [vmem:[#allocation16] sm:$0xff] %v1030_v1 }
 0x51b   :  { %v1034_v3 = vpop.eup %1033  ;;  %786 = vst [vmem:[#allocation16 + $0x8] sm:$0xff] %v1032_v2 }
 0x51c   :  { %v1036_v4 = vpop.eup %1035  ;;  %787 = vst [vmem:[#allocation16 + $0x10] sm:$0xff] %v1034_v3 }
 0x51d   :  { %788 = vst [vmem:[#allocation16 + $0x18] sm:$0xff] %v1036_v4 }
 0x51e   :  { %1224 = shalt.err (!%p1221_p12)
}
 0x51f   :  { %s1225_s28 = scalar_lea.hbm %s1563_s11, 512 }
 0x520   :  { %p1226_p13 = scmp.ne.s32.totalorder %s1563_s11, %s1225_s28  ;;  %p1229_p0 = scmp.lt.u32.totalorder %s1225_s28, %s1563_s11 }
 0x522   :  { %p1231_p1 = pnand %p1229_p0, %p1226_p13 }
 0x524   :  { %1234 = shalt.err (!%p1231_p1)
}
 0x525   :  { %800 = dma.vmem_to_hbm [thread:$0]  %s795_s1, 512, %s1563_s11, [#allocation4], %s1253_s6, %s1253_s6, %s1254_s15  }
 0x526   :  { %1245 = dma.done.wait [#allocation4], 512  }
 0x527   :  { %1246 = vsyncadd [#allocation4], 4294966784 }
 0x528   :  { %804 = vsyncpa [#allocation3], 1 }
 0x529   :  { %805 = vsyncpa [#allocation6], 1 }
 0x52a   :  { %806 = vsyncpa [#allocation9], 1 }
 0x52b   :  { %807 = vsyncpa [#allocation12], 1 }
 0x52c   :  { %808 = vsyncpa [#allocation15], 1 }
 0x52d   :  { %809 = vsyncpa [#allocation4], 1 }

</bundles_post_ra>
